<compile_context>
chip_gen: v7x
topology: tpu7x:2x2x1
jax: 0.10.0
libtpu: 0.0.40
codegen_flags: <defaults>
</compile_context>

<pallas_src>
import functools

import jax
import jax.numpy as jnp
from jax.experimental import pallas as pl
from jax.experimental.pallas import tpu as pltpu


def critic_kernel(s_ref, a_ref, w1s_ref, w1a_ref, b1_ref,
                  w2_ref, b2_ref, w3_ref, b3_ref, o_ref):
    # Layer 1: split matmul replaces cat([state, action]) @ W1.
    h1 = (jnp.dot(s_ref[...], w1s_ref[...], preferred_element_type=jnp.float32)
          + jnp.dot(a_ref[...], w1a_ref[...], preferred_element_type=jnp.float32)
          + b1_ref[...])
    h1 = jnp.maximum(h1, 0.0)                                       # ReLU (f32)

    # Layer 2.
    h2 = jnp.dot(h1.astype(w2_ref.dtype), w2_ref[...],
                 preferred_element_type=jnp.float32) + b2_ref[...]
    h2 = jnp.maximum(h2, 0.0)                                       # ReLU (f32)

    # Layer 3 (output lanes padded to a multiple of 128 at the call boundary).
    out = jnp.dot(h2.astype(w3_ref.dtype), w3_ref[...],
                  preferred_element_type=jnp.float32) + b3_ref[...]
    o_ref[...] = out.astype(o_ref.dtype)


def critic_forward(state, action, params,
                   compute_dtype=jnp.bfloat16, tb_max=512):
    """state: (B, S), action: (B, A) -> (B, output_size), float32."""
    w1, b1, w2, b2, w3, b3 = params
    B, S = state.shape
    A = action.shape[1]
    H = w1.shape[1]
    O = w3.shape[1]

    # --- call-boundary prep (fused under jit) -------------------------------
    # Split W1 so the kernel never needs a concatenated input.
    w1s = w1[:S].astype(compute_dtype)          # (S, H)
    w1a = w1[S:].astype(compute_dtype)          # (A, H)
    w2c = w2.astype(compute_dtype)              # (H, H)

    # Pad the final layer to a lane-dense (>=128, multiple of 128) width.
    O_pad = max(128, ((O + 127) // 128) * 128)
    w3p = jnp.zeros((H, O_pad), compute_dtype).at[:, :O].set(w3.astype(compute_dtype))
    b3p = jnp.zeros((1, O_pad), jnp.float32).at[:, :O].set(b3.astype(jnp.float32))
    b1f = b1.astype(jnp.float32)
    b2f = b2.astype(jnp.float32)

    sx = state.astype(compute_dtype)
    ax = action.astype(compute_dtype)

    # Batch tiling: one block for small batches, (multiple-of-8) tiles + pad
    # otherwise. TB capped so double-buffered tiles + f32 intermediates fit
    # comfortably in v7x's 64 MiB VMEM.
    if B <= tb_max:
        tb, b_pad = B, B
    else:
        tb = tb_max
        b_pad = pl.cdiv(B, tb) * tb
    if b_pad != B:
        pad = ((0, b_pad - B), (0, 0))
        sx = jnp.pad(sx, pad)
        ax = jnp.pad(ax, pad)

    def resident(shape):  # weight/bias: same block every grid step -> DMA'd once
        return pl.BlockSpec(shape, lambda i: (0, 0))

    out_padded = pl.pallas_call(
        critic_kernel,
        out_shape=jax.ShapeDtypeStruct((b_pad, O_pad), jnp.float32),
        grid=(b_pad // tb,),
        in_specs=[
            pl.BlockSpec((tb, S), lambda i: (i, 0)),     # state tile
            pl.BlockSpec((tb, A), lambda i: (i, 0)),     # action tile
            resident(w1s.shape), resident(w1a.shape), resident(b1f.shape),
            resident(w2c.shape), resident(b2f.shape),
            resident(w3p.shape), resident(b3p.shape),
        ],
        out_specs=pl.BlockSpec((tb, O_pad), lambda i: (i, 0)),
        compiler_params=pltpu.CompilerParams(
            dimension_semantics=("parallel",),
            vmem_limit_bytes=64 * 1024 * 1024,
        ),
    )(sx, ax, w1s, w1a, b1f, w2c, b2f, w3p, b3p)

    return out_padded[:B, :O]


def init_critic_params(key, input_size, output_size, hidden_size=256):
    """Deterministic init mimicking nn.Linear's U(-1/sqrt(fan_in), 1/sqrt(fan_in)).

    Weights are stored transposed vs. PyTorch nn.Linear: (in_features, out_features).
    """
    def linear(key, fan_in, fan_out):
        kw, kb = jax.random.split(key)
        bound = 1.0 / jnp.sqrt(jnp.float32(fan_in))
        w = jax.random.uniform(kw, (fan_in, fan_out), jnp.float32, -bound, bound)
        b = jax.random.uniform(kb, (1, fan_out), jnp.float32, -bound, bound)
        return w, b

    k1, k2, k3 = jax.random.split(key, 3)
    w1, b1 = linear(k1, input_size, hidden_size)
    w2, b2 = linear(k2, hidden_size, hidden_size)
    w3, b3 = linear(k3, hidden_size, output_size)
    return (w1, b1, w2, b2, w3, b3)


def critic_reference(state, action, params, compute_dtype=jnp.bfloat16):
    """Pure-JAX reference using the same mixed-precision recipe as the kernel."""
    w1, b1, w2, b2, w3, b3 = params
    x = jnp.concatenate([state, action], axis=-1).astype(compute_dtype)
    h1 = jnp.maximum(
        jnp.dot(x, w1.astype(compute_dtype), preferred_element_type=jnp.float32) + b1, 0.0)
    h2 = jnp.maximum(
        jnp.dot(h1.astype(compute_dtype), w2.astype(compute_dtype),
                preferred_element_type=jnp.float32) + b2, 0.0)
    return jnp.dot(h2.astype(compute_dtype), w3.astype(compute_dtype),
                   preferred_element_type=jnp.float32) + b3


if __name__ == "__main__":
    # Small shapes consistent with the module: state_dim + action_dim = input_size.
    batch = 8
    state_dim = 24
    action_dim = 8
    input_size = state_dim + action_dim      # 32
    hidden_size = 128                        # lane-aligned hidden width
    output_size = 1

    key = jax.random.PRNGKey(0)
    k_params, k_state, k_action = jax.random.split(key, 3)

    params = init_critic_params(k_params, input_size, output_size, hidden_size)
    state = jax.random.normal(k_state, (batch, state_dim), jnp.float32)
    action = jax.random.normal(k_action, (batch, action_dim), jnp.float32)

    critic = jax.jit(functools.partial(critic_forward))
    out = jax.block_until_ready(critic(state, action, params))

    ref = critic_reference(state, action, params)
    assert out.shape == (batch, output_size)
    assert jnp.allclose(out, ref, atol=1e-2, rtol=1e-2), (out, ref)

    print("KERNEL_OK")
</pallas_src>

<mosaic_0001>
module attributes {stable_mosaic.version = 11 : i64} {
  func.func @critic_kernel(%arg0: i32, %arg1: memref<8x24xbf16, #tpu.memory_space<vmem>>, %arg2: memref<8x8xbf16, #tpu.memory_space<vmem>>, %arg3: memref<24x128xbf16, #tpu.memory_space<vmem>>, %arg4: memref<8x128xbf16, #tpu.memory_space<vmem>>, %arg5: memref<1x128xf32, #tpu.memory_space<vmem>>, %arg6: memref<128x128xbf16, #tpu.memory_space<vmem>>, %arg7: memref<1x128xf32, #tpu.memory_space<vmem>>, %arg8: memref<128x128xbf16, #tpu.memory_space<vmem>>, %arg9: memref<1x128xf32, #tpu.memory_space<vmem>>, %arg10: memref<8x128xf32, #tpu.memory_space<vmem>>) attributes {dimension_semantics = [#tpu.dimension_semantics<parallel>], iteration_bounds = array<i64: 1>, scalar_prefetch = 0 : i64, scratch_operands = 0 : i64, tpu.core_type = #tpu.core_type<tc>, window_params = [{transform_indices = @transform_0, window_bounds = array<i64: 8, 24>}, {transform_indices = @transform_1, window_bounds = array<i64: 8, 8>}, {pipeline_mode = #tpu.pipeline_mode<synchronous>, transform_indices = @transform_2, window_bounds = array<i64: 24, 128>}, {pipeline_mode = #tpu.pipeline_mode<synchronous>, transform_indices = @transform_3, window_bounds = array<i64: 8, 128>}, {pipeline_mode = #tpu.pipeline_mode<synchronous>, transform_indices = @transform_4, window_bounds = array<i64: 1, 128>}, {pipeline_mode = #tpu.pipeline_mode<synchronous>, transform_indices = @transform_5, window_bounds = array<i64: 128, 128>}, {pipeline_mode = #tpu.pipeline_mode<synchronous>, transform_indices = @transform_6, window_bounds = array<i64: 1, 128>}, {pipeline_mode = #tpu.pipeline_mode<synchronous>, transform_indices = @transform_7, window_bounds = array<i64: 128, 128>}, {pipeline_mode = #tpu.pipeline_mode<synchronous>, transform_indices = @transform_8, window_bounds = array<i64: 1, 128>}, {transform_indices = @transform_9, window_bounds = array<i64: 8, 128>}]} {
    %c0 = arith.constant 0 : index
    %c0_0 = arith.constant 0 : index
    %0 = vector.load %arg1[%c0, %c0_0] : memref<8x24xbf16, #tpu.memory_space<vmem>>, vector<8x24xbf16>
    %c0_1 = arith.constant 0 : index
    %c0_2 = arith.constant 0 : index
    %1 = vector.load %arg3[%c0_1, %c0_2] : memref<24x128xbf16, #tpu.memory_space<vmem>>, vector<24x128xbf16>
    %cst = arith.constant dense<0.000000e+00> : vector<8x128xf32>
    %2 = tpu.matmul %0, %1, %cst {dimension_numbers = #tpu.dot_dimension_numbers<[1], [0], [0], [1], [0, 0, 1, 1], [], []>} : vector<8x24xbf16>, vector<24x128xbf16>, vector<8x128xf32> -> vector<8x128xf32>
    %c0_3 = arith.constant 0 : index
    %c0_4 = arith.constant 0 : index
    %3 = vector.load %arg2[%c0_3, %c0_4] : memref<8x8xbf16, #tpu.memory_space<vmem>>, vector<8x8xbf16>
    %c0_5 = arith.constant 0 : index
    %c0_6 = arith.constant 0 : index
    %4 = vector.load %arg4[%c0_5, %c0_6] : memref<8x128xbf16, #tpu.memory_space<vmem>>, vector<8x128xbf16>
    %cst_7 = arith.constant dense<0.000000e+00> : vector<8x128xf32>
    %5 = tpu.matmul %3, %4, %cst_7 {dimension_numbers = #tpu.dot_dimension_numbers<[1], [0], [0], [1], [0, 0, 1, 1], [], []>} : vector<8x8xbf16>, vector<8x128xbf16>, vector<8x128xf32> -> vector<8x128xf32>
    %6 = arith.addf %2, %5 : vector<8x128xf32>
    %c0_8 = arith.constant 0 : index
    %c0_9 = arith.constant 0 : index
    %7 = vector.load %arg5[%c0_8, %c0_9] : memref<1x128xf32, #tpu.memory_space<vmem>>, vector<1x128xf32>
    %8 = vector.broadcast %7 : vector<1x128xf32> to vector<8x128xf32>
    %9 = arith.addf %6, %8 : vector<8x128xf32>
    %cst_10 = arith.constant 0.000000e+00 : f32
    %10 = vector.broadcast %cst_10 : f32 to vector<8x128xf32>
    %11 = arith.maximumf %9, %10 : vector<8x128xf32>
    %12 = arith.truncf %11 : vector<8x128xf32> to vector<8x128xbf16>
    %c0_11 = arith.constant 0 : index
    %c0_12 = arith.constant 0 : index
    %13 = vector.load %arg6[%c0_11, %c0_12] : memref<128x128xbf16, #tpu.memory_space<vmem>>, vector<128x128xbf16>
    %cst_13 = arith.constant dense<0.000000e+00> : vector<8x128xf32>
    %14 = tpu.matmul %12, %13, %cst_13 {dimension_numbers = #tpu.dot_dimension_numbers<[1], [0], [0], [1], [0, 0, 1, 1], [], []>} : vector<8x128xbf16>, vector<128x128xbf16>, vector<8x128xf32> -> vector<8x128xf32>
    %c0_14 = arith.constant 0 : index
    %c0_15 = arith.constant 0 : index
    %15 = vector.load %arg7[%c0_14, %c0_15] : memref<1x128xf32, #tpu.memory_space<vmem>>, vector<1x128xf32>
    %16 = vector.broadcast %15 : vector<1x128xf32> to vector<8x128xf32>
    %17 = arith.addf %14, %16 : vector<8x128xf32>
    %cst_16 = arith.constant 0.000000e+00 : f32
    %18 = vector.broadcast %cst_16 : f32 to vector<8x128xf32>
    %19 = arith.maximumf %17, %18 : vector<8x128xf32>
    %20 = arith.truncf %19 : vector<8x128xf32> to vector<8x128xbf16>
    %c0_17 = arith.constant 0 : index
    %c0_18 = arith.constant 0 : index
    %21 = vector.load %arg8[%c0_17, %c0_18] : memref<128x128xbf16, #tpu.memory_space<vmem>>, vector<128x128xbf16>
    %cst_19 = arith.constant dense<0.000000e+00> : vector<8x128xf32>
    %22 = tpu.matmul %20, %21, %cst_19 {dimension_numbers = #tpu.dot_dimension_numbers<[1], [0], [0], [1], [0, 0, 1, 1], [], []>} : vector<8x128xbf16>, vector<128x128xbf16>, vector<8x128xf32> -> vector<8x128xf32>
    %c0_20 = arith.constant 0 : index
    %c0_21 = arith.constant 0 : index
    %23 = vector.load %arg9[%c0_20, %c0_21] : memref<1x128xf32, #tpu.memory_space<vmem>>, vector<1x128xf32>
    %24 = vector.broadcast %23 : vector<1x128xf32> to vector<8x128xf32>
    %25 = arith.addf %22, %24 : vector<8x128xf32>
    %c0_22 = arith.constant 0 : index
    %c0_23 = arith.constant 0 : index
    %26 = vector.load %arg10[%c0_22, %c0_23] : memref<8x128xf32, #tpu.memory_space<vmem>>, vector<8x128xf32>
    tpu.vector_store %arg10[%c0_22, %c0_23], %25 {strides = array<i32>} : memref<8x128xf32, #tpu.memory_space<vmem>>, vector<8x128xf32>,
    return
  }
  func.func @transform_0(%arg0: i32) -> (i32, i32) {
    %c0_i32 = arith.constant 0 : i32
    %c0_i32_0 = arith.constant 0 : i32
    return %arg0, %c0_i32 : i32, i32
  }
  func.func @transform_1(%arg0: i32) -> (i32, i32) {
    %c0_i32 = arith.constant 0 : i32
    %c0_i32_0 = arith.constant 0 : i32
    return %arg0, %c0_i32 : i32, i32
  }
  func.func @transform_2(%arg0: i32) -> (i32, i32) {
    %c0_i32 = arith.constant 0 : i32
    %c0_i32_0 = arith.constant 0 : i32
    %c0_i32_1 = arith.constant 0 : i32
    return %c0_i32, %c0_i32_0 : i32, i32
  }
  func.func @transform_3(%arg0: i32) -> (i32, i32) {
    %c0_i32 = arith.constant 0 : i32
    %c0_i32_0 = arith.constant 0 : i32
    %c0_i32_1 = arith.constant 0 : i32
    return %c0_i32, %c0_i32_0 : i32, i32
  }
  func.func @transform_4(%arg0: i32) -> (i32, i32) {
    %c0_i32 = arith.constant 0 : i32
    %c0_i32_0 = arith.constant 0 : i32
    %c0_i32_1 = arith.constant 0 : i32
    return %c0_i32, %c0_i32_0 : i32, i32
  }
  func.func @transform_5(%arg0: i32) -> (i32, i32) {
    %c0_i32 = arith.constant 0 : i32
    %c0_i32_0 = arith.constant 0 : i32
    %c0_i32_1 = arith.constant 0 : i32
    return %c0_i32, %c0_i32_0 : i32, i32
  }
  func.func @transform_6(%arg0: i32) -> (i32, i32) {
    %c0_i32 = arith.constant 0 : i32
    %c0_i32_0 = arith.constant 0 : i32
    %c0_i32_1 = arith.constant 0 : i32
    return %c0_i32, %c0_i32_0 : i32, i32
  }
  func.func @transform_7(%arg0: i32) -> (i32, i32) {
    %c0_i32 = arith.constant 0 : i32
    %c0_i32_0 = arith.constant 0 : i32
    %c0_i32_1 = arith.constant 0 : i32
    return %c0_i32, %c0_i32_0 : i32, i32
  }
  func.func @transform_8(%arg0: i32) -> (i32, i32) {
    %c0_i32 = arith.constant 0 : i32
    %c0_i32_0 = arith.constant 0 : i32
    %c0_i32_1 = arith.constant 0 : i32
    return %c0_i32, %c0_i32_0 : i32, i32
  }
  func.func @transform_9(%arg0: i32) -> (i32, i32) {
    %c0_i32 = arith.constant 0 : i32
    %c0_i32_0 = arith.constant 0 : i32
    return %arg0, %c0_i32 : i32, i32
  }
}

</mosaic_0001>

<bundles_post_ra>
// kernel: critic_forward.1
= control target key start
LH: loop header
LB: loop body
LE: loop exit
PB: predicated region body
PF: predicated region fallthrough
CT: control target
= control target key end

     0   :  { %14 = vsyncpa [#allocation3], 0  ;;  %s1106_s0 = inlined_call_operand.hbm [shape: bf16[8,24], index: 0, kind: input, shape index: {}]   ;;  %s1107_s1 = inlined_call_operand.hbm [shape: bf16[8,8], index: 1, kind: input, shape index: {}]   ;;  %s1108_s2 = inlined_call_operand.hbm [shape: bf16[24,128], index: 2, kind: input, shape index: {}]   ;;  %s1109_s3 = inlined_call_operand.hbm [shape: bf16[8,128], index: 3, kind: input, shape index: {}]   ;;  %s1110_s4 = inlined_call_operand.hbm [shape: f32[1,128], index: 4, kind: input, shape index: {}]   ;;  %s1111_s5 = inlined_call_operand.hbm [shape: bf16[128,128], index: 5, kind: input, shape index: {}]   ;;  %s1112_s6 = inlined_call_operand.hbm [shape: f32[1,128], index: 6, kind: input, shape index: {}]   ;;  %s1113_s7 = inlined_call_operand.hbm [shape: bf16[128,128], index: 7, kind: input, shape index: {}]   ;;  %s1114_s8 = inlined_call_operand.hbm [shape: f32[1,128], index: 8, kind: input, shape index: {}]   ;;  %s1115_s9 = inlined_call_operand.hbm [shape: f32[8,128], index: 9, kind: output, shape index: {}]  }
   0x1   :  { %15 = vsyncpa [#allocation6], 0 }
   0x2   :  { %16 = vsyncpa [#allocation9], 0 }
   0x3   :  { %17 = vsyncpa [#allocation12], 0 }
   0x4   :  { %18 = vsyncpa [#allocation15], 0 }
   0x5   :  { %19 = vsyncpa [#allocation4], 0  ;;  %s872_s30 = smov [#allocation5]   ;;  %s873_s11 = smov [#allocation8]  }
   0x6   :  { %s36_s10 = sshll.u32 %s872_s30, 4  ;;  %s58_s12 = sshll.u32 %s873_s11, 4  ;;  %s37_s10 = int_to_ptr.vmem [resolvable:$true] %s36_s10  ;;  %s59_s12 = int_to_ptr.vmem [resolvable:$true] %s58_s12 }
   0x7   :  { %s640_s15 = scalar_lea.hbm %s1107_s1, 64 }
   0x8   :  { %p641_p0 = scmp.ne.s32.totalorder %s1107_s1, %s640_s15  ;;  %p644_p1 = scmp.lt.u32.totalorder %s640_s15, %s1107_s1 }
   0xa   :  { %p646_p2 = pnand %p644_p1, %p641_p0 }
   0xc   :  { %649 = shalt.err (!%p646_p2)
}
   0xd   :  { %s650_s20 = scalar_lea.vmem %s37_s10, 64  ;;  %p655_p4 = scmp.lt.s32.totalorder %s37_s10, %s37_s10 }
   0xe   :  { %p651_p3 = scmp.ne.s32.totalorder %s37_s10, %s650_s20  ;;  %p656_p5 = scmp.lt.s32.totalorder %s650_s20, %s650_s20 }
  0x10   :  { %p657_p6 = por %p656_p5, %p655_p4 }
  0x12   :  { %p658_p7 = pnand %p657_p6, %p651_p3 }
  0x14   :  { %661 = shalt.err (!%p658_p7)
}
  0x15   :  { %39 = dma.hbm_to_vmem [thread:$0]  %s1107_s1, 64, %s37_s10, [#allocation6]  }
  0x16   :  { %s662_s25 = scalar_lea.hbm %s1109_s3, 64 }
  0x17   :  { %p663_p8 = scmp.ne.s32.totalorder %s1109_s3, %s662_s25  ;;  %p666_p9 = scmp.lt.u32.totalorder %s662_s25, %s1109_s3 }
  0x19   :  { %p668_p10 = pnand %p666_p9, %p663_p8 }
  0x1b   :  { %671 = shalt.err (!%p668_p10)
}
  0x1c   :  { %s672_s30 = scalar_lea.vmem %s59_s12, 64  ;;  %p677_p12 = scmp.lt.s32.totalorder %s59_s12, %s59_s12 }
  0x1d   :  { %p673_p11 = scmp.ne.s32.totalorder %s59_s12, %s672_s30  ;;  %p678_p13 = scmp.lt.s32.totalorder %s672_s30, %s672_s30 }
  0x1f   :  { %p679_p0 = por %p678_p13, %p677_p12 }
  0x21   :  { %p680_p1 = pnand %p679_p0, %p673_p11 }
  0x23   :  { %683 = shalt.err (!%p680_p1)
}
  0x24   :  { %61 = dma.hbm_to_vmem [thread:$0]  %s1109_s3, 64, %s59_s12, [#allocation9]  }
  0x25   :  { %s874_s11 = smov [#allocation11]   ;;  %s875_s14 = smov [#allocation14]  }
  0x26   :  { %s77_s13 = sshll.u32 %s874_s11, 4  ;;  %s99_s15 = sshll.u32 %s875_s14, 4  ;;  %s78_s13 = int_to_ptr.vmem [resolvable:$true] %s77_s13  ;;  %s960_s15 = int_to_ptr.vmem [resolvable:$true] %s99_s15 }
  0x27   :  { %s684_s18 = scalar_lea.hbm %s1111_s5, 1024 }
  0x28   :  { %p685_p2 = scmp.ne.s32.totalorder %s1111_s5, %s684_s18  ;;  %p688_p3 = scmp.lt.u32.totalorder %s684_s18, %s1111_s5 }
  0x2a   :  { %p690_p4 = pnand %p688_p3, %p685_p2 }
  0x2c   :  { %693 = shalt.err (!%p690_p4)
}
  0x2d   :  { %s694_s3 = scalar_lea.vmem %s78_s13, 1024  ;;  %p699_p6 = scmp.lt.s32.totalorder %s78_s13, %s78_s13 }
  0x2e   :  { %p695_p5 = scmp.ne.s32.totalorder %s78_s13, %s694_s3  ;;  %p700_p7 = scmp.lt.s32.totalorder %s694_s3, %s694_s3 }
  0x30   :  { %p701_p8 = por %p700_p7, %p699_p6 }
  0x32   :  { %p702_p9 = pnand %p701_p8, %p695_p5 }
  0x34   :  { %705 = shalt.err (!%p702_p9)
}
  0x35   :  { %s876_s12 = smov 64   ;;  %s877_s23 = smov 4  }
  0x36   :  { %83 = dma.hbm_to_vmem [thread:$0]  %s1111_s5, 1024, %s78_s13, [#allocation12], %s876_s12, %s876_s12, %s877_s23  }
  0x37   :  { %s706_s28 = scalar_lea.hbm %s1113_s7, 1024 }
  0x38   :  { %p707_p10 = scmp.ne.s32.totalorder %s1113_s7, %s706_s28  ;;  %p710_p11 = scmp.lt.u32.totalorder %s706_s28, %s1113_s7 }
  0x3a   :  { %p712_p12 = pnand %p710_p11, %p707_p10 }
  0x3c   :  { %715 = shalt.err (!%p712_p12)
}
  0x3d   :  { %s716_s11 = scalar_lea.vmem %s960_s15, 1024  ;;  %p721_p0 = scmp.lt.s32.totalorder %s960_s15, %s960_s15 }
  0x3e   :  { %p717_p13 = scmp.ne.s32.totalorder %s960_s15, %s716_s11  ;;  %p722_p1 = scmp.lt.s32.totalorder %s716_s11, %s716_s11 }
  0x40   :  { %p723_p2 = por %p722_p1, %p721_p0 }
  0x42   :  { %p724_p3 = pnand %p723_p2, %p717_p13 }
  0x44   :  { %727 = shalt.err (!%p724_p3)
}
  0x45   :  { %105 = dma.hbm_to_vmem [thread:$0]  %s1113_s7, 1024, %s960_s15, [#allocation15], %s876_s12, %s876_s12, %s877_s23  }
  0x46   :  { %s878_s14 = smov [#allocation2]   ;;  %s879_s17 = smov [#allocation7]  }
  0x47   :  { %s26_s16 = sshll.u32 %s878_s14, 4  ;;  %s45_s18 = sshll.u32 %s879_s17, 4  ;;  %s27_s16 = int_to_ptr.vmem [resolvable:$true] %s26_s16  ;;  %s997_s18 = int_to_ptr.vmem [resolvable:$true] %s45_s18 }
  0x48   :  { %s728_s21 = scalar_lea.hbm %s1106_s0, 64 }
  0x49   :  { %p729_p4 = scmp.ne.s32.totalorder %s1106_s0, %s728_s21  ;;  %p732_p5 = scmp.lt.u32.totalorder %s728_s21, %s1106_s0 }
  0x4b   :  { %p734_p6 = pnand %p732_p5, %p729_p4 }
  0x4d   :  { %737 = shalt.err (!%p734_p6)
}
  0x4e   :  { %s738_s7 = scalar_lea.vmem %s27_s16, 64  ;;  %p743_p8 = scmp.lt.s32.totalorder %s27_s16, %s27_s16 }
  0x4f   :  { %p739_p7 = scmp.ne.s32.totalorder %s27_s16, %s738_s7  ;;  %p744_p9 = scmp.lt.s32.totalorder %s738_s7, %s738_s7 }
  0x51   :  { %p745_p10 = por %p744_p9, %p743_p8 }
  0x53   :  { %p746_p11 = pnand %p745_p10, %p739_p7 }
  0x55   :  { %749 = shalt.err (!%p746_p11)
}
  0x56   :  { %29 = dma.hbm_to_vmem [thread:$0]  %s1106_s0, 64, %s27_s16, [#allocation3]  }
  0x57   :  { %s750_s29 = scalar_lea.hbm %s1108_s2, 192 }
  0x58   :  { %p751_p12 = scmp.ne.s32.totalorder %s1108_s2, %s750_s29  ;;  %p754_p13 = scmp.lt.u32.totalorder %s750_s29, %s1108_s2 }
  0x5a   :  { %p756_p0 = pnand %p754_p13, %p751_p12 }
  0x5c   :  { %759 = shalt.err (!%p756_p0)
}
  0x5d   :  { %s760_s5 = scalar_lea.vmem %s997_s18, 192  ;;  %p765_p2 = scmp.lt.s32.totalorder %s997_s18, %s997_s18 }
  0x5e   :  { %p761_p1 = scmp.ne.s32.totalorder %s997_s18, %s760_s5  ;;  %p766_p3 = scmp.lt.s32.totalorder %s760_s5, %s760_s5 }
  0x60   :  { %p767_p4 = por %p766_p3, %p765_p2 }
  0x62   :  { %p768_p5 = pnand %p767_p4, %p761_p1 }
  0x64   :  { %771 = shalt.err (!%p768_p5)
}
  0x65   :  { %51 = dma.hbm_to_vmem [thread:$0]  %s1108_s2, 192, %s997_s18, [#allocation6], %s876_s12, %s876_s12, %s877_s23  }
  0x66   :  { %s880_s14 = smov [#allocation10]   ;;  %s881_s17 = smov [#allocation13]  }
  0x67   :  { %s68_s16 = sshll.u32 %s880_s14, 4  ;;  %s90_s19 = sshll.u32 %s881_s17, 4  ;;  %s69_s16 = int_to_ptr.vmem [resolvable:$true] %s68_s16  ;;  %s91_s19 = int_to_ptr.vmem [resolvable:$true] %s90_s19 }
  0x68   :  { %s772_s22 = scalar_lea.hbm %s1110_s4, 16 }
  0x69   :  { %p773_p6 = scmp.ne.s32.totalorder %s1110_s4, %s772_s22  ;;  %p776_p7 = scmp.lt.u32.totalorder %s772_s22, %s1110_s4 }
  0x6b   :  { %p778_p8 = pnand %p776_p7, %p773_p6 }
  0x6d   :  { %781 = shalt.err (!%p778_p8)
}
  0x6e   :  { %s782_s2 = scalar_lea.vmem %s69_s16, 16  ;;  %s786_s12 = scalar_lea.vmem %s69_s16, 32 }
  0x6f   :  { %p783_p9 = scmp.ne.s32.totalorder %s69_s16, %s782_s2  ;;  %p787_p10 = scmp.lt.s32.totalorder %s69_s16, %s69_s16 }
  0x70   :  { %p788_p11 = scmp.lt.s32.totalorder %s786_s12, %s782_s2 }
  0x72   :  { %p789_p12 = por %p788_p11, %p787_p10 }
  0x74   :  { %p790_p13 = pnand %p789_p12, %p783_p9 }
  0x76   :  { %793 = shalt.err (!%p790_p13)
}
  0x77   :  { %71 = dma.hbm_to_vmem [thread:$0]  %s1110_s4, 16, %s69_s16, [#allocation9]  }
  0x78   :  { %s794_s27 = scalar_lea.hbm %s1112_s6, 16 }
  0x79   :  { %p795_p0 = scmp.ne.s32.totalorder %s1112_s6, %s794_s27  ;;  %p798_p1 = scmp.lt.u32.totalorder %s794_s27, %s1112_s6 }
  0x7b   :  { %p800_p2 = pnand %p798_p1, %p795_p0 }
  0x7d   :  { %803 = shalt.err (!%p800_p2)
}
  0x7e   :  { %s804_s10 = scalar_lea.vmem %s91_s19, 16  ;;  %s808_s11 = scalar_lea.vmem %s91_s19, 32 }
  0x7f   :  { %p805_p3 = scmp.ne.s32.totalorder %s91_s19, %s804_s10  ;;  %p809_p4 = scmp.lt.s32.totalorder %s91_s19, %s91_s19 }
  0x80   :  { %p810_p5 = scmp.lt.s32.totalorder %s808_s11, %s804_s10 }
  0x82   :  { %p811_p6 = por %p810_p5, %p809_p4 }
  0x84   :  { %p812_p7 = pnand %p811_p6, %p805_p3 }
  0x86   :  { %815 = shalt.err (!%p812_p7)
}
  0x87   :  { %93 = dma.hbm_to_vmem [thread:$0]  %s1112_s6, 16, %s91_s19, [#allocation12]  }
  0x88   :  { %s882_s0 = smov [#allocation16]   ;;  %s816_s17 = scalar_lea.hbm %s1114_s8, 16 }
  0x89   :  { %s112_s13 = sshll.u32 %s882_s0, 4  ;;  %p817_p8 = scmp.ne.s32.totalorder %s1114_s8, %s816_s17  ;;  %s113_s13 = int_to_ptr.vmem [resolvable:$true] %s112_s13 }
  0x8a   :  { %p820_p9 = scmp.lt.u32.totalorder %s816_s17, %s1114_s8 }
  0x8c   :  { %p822_p10 = pnand %p820_p9, %p817_p8 }
  0x8e   :  { %825 = shalt.err (!%p822_p10)
}
  0x8f   :  { %s826_s24 = scalar_lea.vmem %s113_s13, 16  ;;  %s830_s6 = scalar_lea.vmem %s113_s13, 32 }
  0x90   :  { %p827_p11 = scmp.ne.s32.totalorder %s113_s13, %s826_s24  ;;  %p831_p12 = scmp.lt.s32.totalorder %s113_s13, %s113_s13 }
  0x91   :  { %p832_p13 = scmp.lt.s32.totalorder %s830_s6, %s826_s24 }
  0x93   :  { %p833_p0 = por %p832_p13, %p831_p12 }
  0x95   :  { %p834_p1 = pnand %p833_p0, %p827_p11 }
  0x97   :  { %837 = shalt.err (!%p834_p1)
}
  0x98   :  { %115 = dma.hbm_to_vmem [thread:$0]  %s1114_s8, 16, %s113_s13, [#allocation15]  }
  0x99   :  { %860 = dma.done.wait [#allocation3], 64  }
  0x9a   :  { %861 = vsyncadd [#allocation3], 4294967232 }
  0x9b   :  { %862 = dma.done.wait [#allocation6], 256  }
  0x9c   :  { %863 = vsyncadd [#allocation6], 4294967040 }
  0x9d   :  { %864 = dma.done.wait [#allocation9], 80  }
  0x9e   :  { %865 = vsyncadd [#allocation9], 4294967216 }
  0x9f   :  { %866 = dma.done.wait [#allocation12], 1040  }
  0xa0   :  { %867 = vsyncadd [#allocation12], 4294966256 }
  0xa1   :  { %868 = dma.done.wait [#allocation15], 1040  }
  0xa2   :  { %869 = vsyncadd [#allocation15], 4294966256  ;;  %v883_v0 = vmov 0.0   ;;  %vm884_vm0 = vmmov 0   ;;  %vm154_vm1 = vcmask 1043456   ;;  %v622_v1 = vld [vmem:[#allocation7] sm:$0xff]  }
  0xa3   :  { %560 = vmatprep.subr.bf16.mxu1 %v883_v0  ;;  %554 = vmatprep.subr.bf16.mxu0 %v883_v0  ;;  %v149_v2 = vld [vmem:[#allocation8] sm:$0xf]  ;;  %vm150_vm2 = vcmask 64512   ;;  %v148_v4 = vld [vmem:[#allocation5] sm:$0xf]  ;;  %v624_v6 = vld [vmem:[#allocation11] sm:$0xff]  }
  0xa4   :  { %556 = vmatprep.mubr.msk.bf16.mxu0 %vm884_vm0, %v883_v0  ;;  %564 = vmatprep.mubr.msk.bf16.mxu1 %vm884_vm0, %v883_v0  ;;  %v156_v3 = vsel %vm154_vm1, %v149_v2, 0  ;;  %v623_v5 = vld [vmem:[#allocation7 + $0x8] ss:$0 sps:$4 sm:$0xff]   ;;  %vm207_vm3 = vcmask 195584   ;;  %v144_v8 = vld [vmem:[#allocation2] sm:$0xf] }
  0xa5   :  { %561 = vmatpush3.bf16.msra.mxu1 %v622_v1  ;;  %555 = vmatpush3.bf16.msra.mxu0 %v156_v3  ;;  %v212_v7 = vsel %vm154_vm1, %v623_v5, 0  ;;  %v625_v9 = vld [vmem:[#allocation11 + $0x8] sm:$0xff]   ;;  %v626_v10 = vld [vmem:[#allocation11 + $0x10] sm:$0xff]   ;;  %v627_v11 = vld [vmem:[#allocation11 + $0x18] sm:$0xff]   ;;  %s885_s8 = smov [#allocation17]  }
  0xa6   :  { %562 = vmatprep.subr.bf16.mxu1 %v883_v0  ;;  %568 = vmatprep.subr.bf16.mxu0 %v883_v0  ;;  %v628_v12 = vld [vmem:[#allocation11 + $0x20] sm:$0xff]   ;;  %v629_v13 = vld [vmem:[#allocation11 + $0x28] sm:$0xff]   ;;  %v630_v14 = vld [vmem:[#allocation11 + $0x30] sm:$0xff]   ;;  %s495_s7 = sshll.u32 %s885_s8, 4  ;;  %s496_s7 = int_to_ptr.vmem [resolvable:$true] %s495_s7 }
  0xa7   :  { %v631_v15 = vld [vmem:[#allocation11 + $0x38] sm:$0xff]   ;;  %v632_v16 = vld [vmem:[#allocation14] sm:$0xff]   ;;  %v633_v17 = vld [vmem:[#allocation14 + $0x8] sm:$0xff]   ;;  %s838_s2 = scalar_lea.vmem %s496_s7, 128  ;;  %p843_p3 = scmp.lt.s32.totalorder %s496_s7, %s496_s7 }
  0xa8   :  { %557 = vmatmul.mubr.msk.bf16.vlgmr.msra.gmra.mrb[0].mxu0 %vm150_vm2, %v148_v4  ;;  %v634_v18 = vld [vmem:[#allocation14 + $0x10] sm:$0xff]   ;;  %v635_v19 = vld [vmem:[#allocation14 + $0x18] sm:$0xff]   ;;  %v636_v20 = vld [vmem:[#allocation14 + $0x20] sm:$0xff]   ;;  %p839_p2 = scmp.ne.s32.totalorder %s496_s7, %s838_s2  ;;  %p844_p4 = scmp.lt.s32.totalorder %s838_s2, %s838_s2 }
  0xa9   :  { %563 = vmatpush3.bf16.msra.mxu1 %v212_v7  ;;  %569 = vmatpush3.bf16.msra.mxu0 %v624_v6  ;;  %v637_v21 = vld [vmem:[#allocation14 + $0x28] sm:$0xff]   ;;  %v512_v27 = vld [vmem:[#allocation10] ss:$0 sm:$0xff]  ;;  %v638_v35 = vld [vmem:[#allocation14 + $0x30] sm:$0xff]  }
  0xaa   :  { %584 = vmatprep.mubr.msk.bf16.mxu0 %vm884_vm0, %v883_v0  ;;  %570 = vmatprep.subr.bf16.mxu0 %v883_v0  ;;  %v639_v36 = vld [vmem:[#allocation14 + $0x38] sm:$0xff]   ;;  %v522_v45 = vld [vmem:[#allocation16] ss:$0 sm:$0xff]  ;;  %p845_p5 = por %p844_p4, %p843_p3 }
  0xab   :  { %588 = vmatprep.subr.bf16.mxu1 %v883_v0  ;;  %v513_v37 = vld [vmem:[#allocation13] ss:$0 sm:$0xff] }
  0xac   :  { %565 = vmatmul.mubr.msk.bf16.vlgmr.msra.gmra.mrb[0].mxu1 %vm207_vm3, %v144_v8  ;;  %p846_p6 = pnand %p845_p5, %p839_p2 }
  0xad   :  { %604 = vmatprep.mubr.msk.bf16.mxu1 %vm884_vm0, %v883_v0  ;;  %571 = vmatpush3.bf16.msra.mxu0 %v625_v9 }
  0xae   :  { %572 = vmatprep.subr.bf16.mxu0 %v883_v0  ;;  %589 = vmatpush3.bf16.msra.mxu1 %v632_v16 }
  0xaf   :  { %590 = vmatprep.subr.bf16.mxu1 %v883_v0 }
  0xb1   :  { %573 = vmatpush3.bf16.msra.mxu0 %v626_v10 }
  0xb2   :  { %574 = vmatprep.subr.bf16.mxu0 %v883_v0  ;;  %591 = vmatpush3.bf16.msra.mxu1 %v633_v17 }
  0xb3   :  { %592 = vmatprep.subr.bf16.mxu1 %v883_v0 }
  0xb5   :  { %575 = vmatpush3.bf16.msra.mxu0 %v627_v11 }
  0xb6   :  { %576 = vmatprep.subr.bf16.mxu0 %v883_v0  ;;  %593 = vmatpush3.bf16.msra.mxu1 %v634_v18 }
  0xb7   :  { %594 = vmatprep.subr.bf16.mxu1 %v883_v0 }
  0xb9   :  { %577 = vmatpush3.bf16.msra.mxu0 %v628_v12 }
  0xba   :  { %578 = vmatprep.subr.bf16.mxu0 %v883_v0  ;;  %595 = vmatpush3.bf16.msra.mxu1 %v635_v19 }
  0xbb   :  { %596 = vmatprep.subr.bf16.mxu1 %v883_v0 }
  0xbd   :  { %579 = vmatpush3.bf16.msra.mxu0 %v629_v13 }
  0xbe   :  { %580 = vmatprep.subr.bf16.mxu0 %v883_v0  ;;  %597 = vmatpush3.bf16.msra.mxu1 %v636_v20 }
  0xbf   :  { %598 = vmatprep.subr.bf16.mxu1 %v883_v0 }
  0xc1   :  { %581 = vmatpush3.bf16.msra.mxu0 %v630_v14 }
  0xc2   :  { %582 = vmatprep.subr.bf16.mxu0 %v883_v0  ;;  %599 = vmatpush3.bf16.msra.mxu1 %v637_v21 }
  0xc3   :  { %600 = vmatprep.subr.bf16.mxu1 %v883_v0 }
  0xc5   :  { %583 = vmatpush3.bf16.msra.mxu0 %v631_v15 }
  0xc6   :  { %601 = vmatpush3.bf16.msra.mxu1 %v638_v35 }
  0xc7   :  { %602 = vmatprep.subr.bf16.mxu1 %v883_v0 }
  0xca   :  { %603 = vmatpush3.bf16.msra.mxu1 %v639_v36 }
 0x17b   :  { %v192_v22 = vpop.f32.mrb[0].mxu0 }
 0x17c   :  { %v558_v23 = vpop.f32.mrb[1].mxu0 }
 0x17d   :  { %v195_v24 = vpop.f32.mrb[2].mxu0 }
 0x17e   :  { %v559_v25 = vpop.f32.mrb[3].mxu0 }
 0x17f   :  { %v248_v26 = vpop.f32.mrb[0].mxu1 }
 0x180   :  { %v249_v28 = vadd.f32 %v248_v26, %v192_v22  ;;  %v566_v29 = vpop.f32.mrb[1].mxu1 }
 0x181   :  { %v251_v30 = vpop.f32.mrb[2].mxu1 }
 0x182   :  { %v261_v31 = vadd.f32 %v512_v27, %v249_v28  ;;  %v567_v32 = vpop.f32.mrb[3].mxu1 }
 0x184   :  { %v262_v33 = vmax.f32 %v261_v31, 0.0 }
 0x186   :  { %v263_v34 = vpack.c.bf16 %v262_v33, %v262_v33 }
 0x188   :  { %585 = vmatmul.mubr.bf16.vlgmr.msra.gmra.mrb[4].mxu0 %v263_v34 }
 0x25b   :  { %v369_v38 = vpop.f32.mrb[4].mxu0 }
 0x25c   :  { %v370_v39 = vadd.f32 %v513_v37, %v369_v38  ;;  %v586_v40 = vpop.f32.mrb[5].mxu0 }
 0x25d   :  { %v372_v41 = vpop.f32.mrb[6].mxu0 }
 0x25e   :  { %v375_v42 = vmax.f32 %v370_v39, 0.0  ;;  %v587_v43 = vpop.f32.mrb[7].mxu0 }
 0x260   :  { %v376_v44 = vpack.c.bf16 %v375_v42, %v375_v42 }
 0x262   :  { %605 = vmatmul.mubr.bf16.vlgmr.msra.gmra.mrb[4].mxu1 %v376_v44 }
 0x335   :  { %v482_v46 = vpop.f32.mrb[4].mxu1 }
 0x336   :  { %v483_v47 = vadd.f32 %v522_v45, %v482_v46  ;;  %v606_v48 = vpop.f32.mrb[5].mxu1 }
 0x337   :  { %v485_v49 = vpop.f32.mrb[6].mxu1 }
 0x338   :  { %488 = vst [vmem:[#allocation17] sm:$0xff] %v483_v47  ;;  %v607_v50 = vpop.f32.mrb[7].mxu1 }
 0x339   :  { %849 = shalt.err (!%p846_p6)
}
 0x33a   :  { %s850_s18 = scalar_lea.hbm %s1115_s9, 128 }
 0x33b   :  { %p851_p7 = scmp.ne.s32.totalorder %s1115_s9, %s850_s18  ;;  %p854_p8 = scmp.lt.u32.totalorder %s850_s18, %s1115_s9 }
 0x33d   :  { %p856_p9 = pnand %p854_p8, %p851_p7 }
 0x33f   :  { %859 = shalt.err (!%p856_p9)
}
 0x340   :  { %498 = dma.vmem_to_hbm [thread:$0]  %s496_s7, 128, %s1115_s9, [#allocation4]  }
 0x341   :  { %870 = dma.done.wait [#allocation4], 128  }
 0x342   :  { %871 = vsyncadd [#allocation4], 4294967168 }
 0x343   :  { %502 = vsyncpa [#allocation3], 1 }
 0x344   :  { %503 = vsyncpa [#allocation6], 1 }
 0x345   :  { %504 = vsyncpa [#allocation9], 1 }
 0x346   :  { %505 = vsyncpa [#allocation12], 1 }
 0x347   :  { %506 = vsyncpa [#allocation15], 1 }
 0x348   :  { %507 = vsyncpa [#allocation4], 1 }

</bundles_post_ra>
